<compile_context>
chip_gen: v6e
topology: v6e:2x2x1
jax: 0.10.0
libtpu: 0.0.40
codegen_flags: <defaults>
</compile_context>

<pallas_src>
import jax
import jax.numpy as jnp
from jax import lax
from jax.experimental import pallas as pl
from jax.experimental.pallas import tpu as pltpu


# ----------------------------------------------------------------------------
# helpers
# ----------------------------------------------------------------------------
def _round_up(x, m):
    return ((x + m - 1) // m) * m


def _activation(name, y):
    if name == "tanh":
        return jnp.tanh(y)
    elif name == "relu":
        return jnp.maximum(y, 0.0)
    elif name == "silu":
        return y * jax.nn.sigmoid(y)
    else:
        raise ValueError(f"unknown activation {name}")


# ----------------------------------------------------------------------------
# kernel
# ----------------------------------------------------------------------------
# dot_general dimension numbers:
_CONTRACT_RHS_LAST = (((1,), (1,)), ((), ()))  # A(m,k) @ B(n,k)^T -> (m,n)
_CONTRACT_CANON = (((1,), (0,)), ((), ()))     # A(m,k) @ B(k,n)   -> (m,n)


def _make_mlp_kernel(n_hidden, activation_type, matmul_dtype):
    """Kernel refs: (x, w0, b0, ..., w_{H-1}, b_{H-1}, w_last, b_last, out).

    x_ref   : (TB, input_size)       original x dtype (cast in-kernel)
    w_i     : (out_i, in_i)          param dtype (PyTorch Linear layout)
    b_i     : (out_i, 1)             float32 (column -> broadcasts over lanes)
    w_last  : (1, H_last)            param dtype (final out_features == 1)
    b_last  : (1,)                   float32 SMEM scalar
    out_ref : (1, 1, TB)             lane-dense (batch on lanes)
    """

    def _mm(a, b, dn):
        if matmul_dtype is not None:
            a = a.astype(matmul_dtype)
            b = b.astype(matmul_dtype)
        return lax.dot_general(a, b, dn, preferred_element_type=jnp.float32)

    def kernel(*refs):
        x_ref = refs[0]
        w_last_ref = refs[-3]
        b_last_ref = refs[-2]
        out_ref = refs[-1]

        if n_hidden == 0:
            z = _mm(w_last_ref[...], x_ref[...], _CONTRACT_RHS_LAST)  # (1, TB)
        else:
            # First layer: contract the feature axis of both W0 and x so the
            # result lands batch-on-lanes: (out0, TB).
            h = _mm(refs[1][...], x_ref[...], _CONTRACT_RHS_LAST)
            h = _activation(activation_type, h + refs[2][...])        # f32
            for i in range(1, n_hidden):
                acc = _mm(refs[1 + 2 * i][...], h, _CONTRACT_CANON)   # (out_i, TB)
                h = _activation(activation_type, acc + refs[2 + 2 * i][...])
            # Final width-1 layer: (1, H) @ (H, TB) -> (1, TB), lane-dense.
            z = _mm(w_last_ref[...], h, _CONTRACT_CANON)

        z = z + b_last_ref[0]
        out_ref[...] = z[None].astype(out_ref.dtype)                  # (1,1,TB)

    return kernel


# ----------------------------------------------------------------------------
# parameter packing (hoisted out of the per-call path)
# ----------------------------------------------------------------------------
def pack_params(weights, biases, param_dtype=jnp.float32):
    """Pack parameters once.

    weights: list of [out_i, in_i]  (PyTorch nn.Linear layout, kept as-is)
    biases : list of [out_i]
    returns: (hidden_ws (out,in), hidden_bs (out,1) f32, w_last (1,H), b_last (1,) f32)
    """
    assert len(weights) == len(biases) and len(weights) >= 1
    assert weights[-1].shape[0] == 1, "final layer must have out_features == 1"
    hidden_ws = [jnp.asarray(w, param_dtype) for w in weights[:-1]]
    hidden_bs = [jnp.asarray(b, jnp.float32).reshape(-1, 1) for b in biases[:-1]]
    w_last = jnp.asarray(weights[-1], param_dtype).reshape(1, -1)
    b_last = jnp.asarray(biases[-1], jnp.float32).reshape(1)
    return hidden_ws, hidden_bs, w_last, b_last


# ----------------------------------------------------------------------------
# forward
# ----------------------------------------------------------------------------
def ez_stability_mlp_forward(x, packed_params, activation_type="tanh",
                             matmul_dtype=None, block_batch=8192):
    """Pallas forward for EzStabilityMLP.

    x: [batch, input_size]; returns [batch, 1] in x.dtype.
    matmul_dtype: None -> f32 matmuls; jnp.bfloat16 -> bf16 MXU operands with
                  f32 accumulation (recommended on v6e / v7x).
    """
    hidden_ws, hidden_bs, w_last, b_last = packed_params
    orig_dtype = x.dtype
    batch, in_dim = x.shape

    # --- batch tile selection -------------------------------------------------
    # Large tiles amortize the ~0.35 us per-grid-step overhead; round to 128 so
    # the lane-dense output stores are unmasked; keep >= 2 grid steps so the
    # "parallel" batch axis can split across both v7x TensorCores.
    if batch >= 256:
        align = 128
        tb = min(_round_up(block_batch, align),
                 _round_up(pl.cdiv(batch, 2), align))
    else:
        align = 8
        tb = _round_up(min(block_batch, batch), align)
    num_tiles = pl.cdiv(batch, tb)   # tail tile handled by Pallas edge padding

    # --- args + specs ----------------------------------------------------------
    args = [x]
    in_specs = [pl.BlockSpec((tb, in_dim), lambda i: (i, 0))]
    for w, b in zip(hidden_ws, hidden_bs):
        args += [w, b]
        in_specs += [pl.BlockSpec(w.shape, lambda i: (0, 0)),
                     pl.BlockSpec(b.shape, lambda i: (0, 0))]
    args += [w_last, b_last]
    in_specs += [pl.BlockSpec(w_last.shape, lambda i: (0, 0)),
                 pl.BlockSpec(memory_space=pltpu.MemorySpace.SMEM)]

    out_specs = pl.BlockSpec((1, 1, tb), lambda i: (i, 0, 0))

    kernel = _make_mlp_kernel(len(hidden_ws), activation_type, matmul_dtype)

    # --- VMEM budget & cost estimate -------------------------------------------
    x_itemsize = jnp.dtype(orig_dtype).itemsize
    param_bytes = sum(int(a.size) * jnp.dtype(a.dtype).itemsize for a in args[1:])
    widths = [in_dim] + [w.shape[0] for w in hidden_ws] + [1]
    max_w = max(widths)
    est = (2 * tb * in_dim * x_itemsize        # streamed x (double buffered)
           + 2 * tb * x_itemsize               # output tiles
           + 2 * param_bytes                   # resident params
           + 6 * max_w * tb * 4)               # f32 activations / matmul temps
    try:
        vmem_cap = int(pltpu.get_tpu_info().vmem_capacity_bytes)
    except Exception:
        vmem_cap = 64 << 20                    # conservative (v7x per-TC)
    vmem_ceiling = min(int(vmem_cap * 0.8), 100 << 20)
    vmem_limit = int(min(max(2 * est + (8 << 20), 32 << 20), vmem_ceiling))

    flops = 2 * batch * sum(int(w.size) for w in (hidden_ws + [w_last]))
    trans = batch * sum(w.shape[0] for w in hidden_ws) \
        if activation_type in ("tanh", "silu") else 0
    bytes_accessed = batch * in_dim * x_itemsize + batch * x_itemsize + param_bytes
    cost = pl.CostEstimate(flops=int(flops), transcendentals=int(trans),
                           bytes_accessed=int(bytes_accessed))

    out = pl.pallas_call(
        kernel,
        out_shape=jax.ShapeDtypeStruct((num_tiles, 1, tb), orig_dtype),
        grid=(num_tiles,),
        in_specs=in_specs,
        out_specs=out_specs,
        compiler_params=pltpu.CompilerParams(
            dimension_semantics=("parallel",),
            vmem_limit_bytes=vmem_limit,
        ),
        cost_estimate=cost,
    )(*args)

    # (num_tiles, 1, TB) lane-dense -> [batch, 1]  (tail-tile garbage sliced off)
    return out.reshape(num_tiles * tb)[:batch].reshape(batch, 1)


# ----------------------------------------------------------------------------
# init + pure-JAX reference (matches the PyTorch module semantics)
# ----------------------------------------------------------------------------
def init_params(key, input_size, hidden_layer_size):
    layer_size = [input_size] + hidden_layer_size + [1]
    weights, biases = [], []
    for i in range(len(layer_size) - 1):
        fan_in, fan_out = layer_size[i], layer_size[i + 1]
        key, wk, bk = jax.random.split(key, 3)
        bound = 1.0 / jnp.sqrt(fan_in)
        weights.append(
            jax.random.uniform(wk, (fan_out, fan_in), jnp.float32, -bound, bound))
        biases.append(
            jax.random.uniform(bk, (fan_out,), jnp.float32, -bound, bound))
    return weights, biases


def reference_forward(x, weights, biases, activation_type="tanh"):
    y = x.astype(jnp.float32)
    for i, (w, b) in enumerate(zip(weights, biases)):
        y = y @ w.T + b
        if i < len(weights) - 1:
            y = _activation(activation_type, y)
    return y.astype(x.dtype)


# ----------------------------------------------------------------------------
# main
# ----------------------------------------------------------------------------
if __name__ == "__main__":
    key = jax.random.PRNGKey(0)

    input_size = 16
    hidden_layer_size = [32, 32]
    activation_type = "tanh"

    key, pkey = jax.random.split(key)
    weights, biases = init_params(pkey, input_size, hidden_layer_size)
    packed = pack_params(weights, biases, jnp.float32)

    # 1) f32 path, single tile (batch=8).
    key, xkey = jax.random.split(key)
    x = jax.random.normal(xkey, (8, input_size), jnp.float32)
    ref = reference_forward(x, weights, biases, activation_type)
    out = jax.block_until_ready(
        ez_stability_mlp_forward(x, packed, activation_type))
    assert out.shape == (8, 1), out.shape
    assert jnp.allclose(out, ref, atol=1e-5, rtol=1e-5), (out, ref)

    # 2) f32 path, multi-tile grid with a partial (edge-padded) tail tile:
    #    batch=20, TB=8 -> 3 tiles, no wrapper-side pad/cast of x.
    key, xkey2 = jax.random.split(key)
    x2 = jax.random.normal(xkey2, (20, input_size), jnp.float32)
    ref2 = reference_forward(x2, weights, biases, activation_type)
    out2 = jax.block_until_ready(
        ez_stability_mlp_forward(x2, packed, activation_type, block_batch=8))
    assert out2.shape == (20, 1), out2.shape
    assert jnp.allclose(out2, ref2, atol=1e-5, rtol=1e-5), (out2, ref2)

    # 3) f32 path, 128-aligned tiles + >=2 grid steps (v7x megacore path):
    #    batch=300 -> TB=256, 2 tiles, last one partial.
    key, xkey3 = jax.random.split(key)
    x3 = jax.random.normal(xkey3, (300, input_size), jnp.float32)
    ref3 = reference_forward(x3, weights, biases, activation_type)
    out3 = jax.block_until_ready(
        ez_stability_mlp_forward(x3, packed, activation_type))
    assert out3.shape == (300, 1), out3.shape
    assert jnp.allclose(out3, ref3, atol=1e-5, rtol=1e-5), (out3, ref3)

    # 4) bf16 matmul-operand path (v6e/v7x fast path: bf16 MXU operands,
    #    f32 accumulation + f32 bias/tanh) -> loose tolerance vs f32 reference.
    out4 = jax.block_until_ready(
        ez_stability_mlp_forward(x, packed, activation_type,
                                 matmul_dtype=jnp.bfloat16))
    assert out4.shape == (8, 1), out4.shape
    assert jnp.allclose(out4, ref, atol=0.1, rtol=0.1), (out4, ref)

    print("KERNEL_OK")
</pallas_src>

<mosaic_0001>
module attributes {stable_mosaic.version = 11 : i64} {
  func.func @kernel(%arg0: i32, %arg1: memref<8x16xf32, #tpu.memory_space<vmem>>, %arg2: memref<32x16xf32, #tpu.memory_space<vmem>>, %arg3: memref<32x1xf32, #tpu.memory_space<vmem>>, %arg4: memref<32x32xf32, #tpu.memory_space<vmem>>, %arg5: memref<32x1xf32, #tpu.memory_space<vmem>>, %arg6: memref<1x32xf32, #tpu.memory_space<vmem>>, %arg7: memref<1xf32, #tpu.memory_space<smem>>, %arg8: memref<1x1x8xf32, #tpu.memory_space<vmem>>) attributes {dimension_semantics = [#tpu.dimension_semantics<parallel>], iteration_bounds = array<i64: 1>, scalar_prefetch = 0 : i64, scratch_operands = 0 : i64, tpu.core_type = #tpu.core_type<tc>, window_params = [{transform_indices = @transform_0, window_bounds = array<i64: 8, 16>}, {pipeline_mode = #tpu.pipeline_mode<synchronous>, transform_indices = @transform_1, window_bounds = array<i64: 32, 16>}, {pipeline_mode = #tpu.pipeline_mode<synchronous>, transform_indices = @transform_2, window_bounds = array<i64: 32, 1>}, {pipeline_mode = #tpu.pipeline_mode<synchronous>, transform_indices = @transform_3, window_bounds = array<i64: 32, 32>}, {pipeline_mode = #tpu.pipeline_mode<synchronous>, transform_indices = @transform_4, window_bounds = array<i64: 32, 1>}, {pipeline_mode = #tpu.pipeline_mode<synchronous>, transform_indices = @transform_5, window_bounds = array<i64: 1, 32>}, {transform_indices = @transform_6, window_bounds = array<i64: 1>}, {transform_indices = @transform_7, window_bounds = array<i64: 1, 1, 8>}]} {
    %c0 = arith.constant 0 : index
    %c0_0 = arith.constant 0 : index
    %0 = vector.load %arg2[%c0, %c0_0] : memref<32x16xf32, #tpu.memory_space<vmem>>, vector<32x16xf32>
    %c0_1 = arith.constant 0 : index
    %c0_2 = arith.constant 0 : index
    %1 = vector.load %arg1[%c0_1, %c0_2] : memref<8x16xf32, #tpu.memory_space<vmem>>, vector<8x16xf32>
    %cst = arith.constant dense<0.000000e+00> : vector<32x8xf32>
    %2 = tpu.matmul %0, %1, %cst {dimension_numbers = #tpu.dot_dimension_numbers<[1], [1], [0], [0], [0, 0, 1, 0], [], []>} : vector<32x16xf32>, vector<8x16xf32>, vector<32x8xf32> -> vector<32x8xf32>
    %c0_3 = arith.constant 0 : index
    %c0_4 = arith.constant 0 : index
    %3 = vector.load %arg3[%c0_3, %c0_4] : memref<32x1xf32, #tpu.memory_space<vmem>>, vector<32x1xf32>
    %4 = vector.broadcast %3 : vector<32x1xf32> to vector<32x8xf32>
    %5 = arith.addf %2, %4 : vector<32x8xf32>
    %6 = math.tanh %5 : vector<32x8xf32>
    %c0_5 = arith.constant 0 : index
    %c0_6 = arith.constant 0 : index
    %7 = vector.load %arg4[%c0_5, %c0_6] : memref<32x32xf32, #tpu.memory_space<vmem>>, vector<32x32xf32>
    %cst_7 = arith.constant dense<0.000000e+00> : vector<32x8xf32>
    %8 = tpu.matmul %7, %6, %cst_7 {dimension_numbers = #tpu.dot_dimension_numbers<[1], [0], [0], [1], [0, 0, 1, 1], [], []>} : vector<32x32xf32>, vector<32x8xf32>, vector<32x8xf32> -> vector<32x8xf32>
    %c0_8 = arith.constant 0 : index
    %c0_9 = arith.constant 0 : index
    %9 = vector.load %arg5[%c0_8, %c0_9] : memref<32x1xf32, #tpu.memory_space<vmem>>, vector<32x1xf32>
    %10 = vector.broadcast %9 : vector<32x1xf32> to vector<32x8xf32>
    %11 = arith.addf %8, %10 : vector<32x8xf32>
    %12 = math.tanh %11 : vector<32x8xf32>
    %c0_10 = arith.constant 0 : index
    %c0_11 = arith.constant 0 : index
    %13 = vector.load %arg6[%c0_10, %c0_11] : memref<1x32xf32, #tpu.memory_space<vmem>>, vector<1x32xf32>
    %cst_12 = arith.constant dense<0.000000e+00> : vector<1x8xf32>
    %14 = tpu.matmul %13, %12, %cst_12 {dimension_numbers = #tpu.dot_dimension_numbers<[1], [0], [0], [1], [0, 0, 1, 1], [], []>} : vector<1x32xf32>, vector<32x8xf32>, vector<1x8xf32> -> vector<1x8xf32>
    %c0_13 = arith.constant 0 : index
    %15 = memref.load %arg7[%c0_13] : memref<1xf32, #tpu.memory_space<smem>>
    %16 = vector.broadcast %15 : f32 to vector<1x8xf32>
    %17 = arith.addf %14, %16 : vector<1x8xf32>
    %18 = vector.shape_cast %17 : vector<1x8xf32> to vector<1x1x8xf32>
    %c0_14 = arith.constant 0 : index
    %c0_15 = arith.constant 0 : index
    %c0_16 = arith.constant 0 : index
    %19 = vector.load %arg8[%c0_14, %c0_15, %c0_16] : memref<1x1x8xf32, #tpu.memory_space<vmem>>, vector<1x1x8xf32>
    tpu.vector_store %arg8[%c0_14, %c0_15, %c0_16], %18 {strides = array<i32>} : memref<1x1x8xf32, #tpu.memory_space<vmem>>, vector<1x1x8xf32>,
    return
  }
  func.func @transform_0(%arg0: i32) -> (i32, i32) {
    %c0_i32 = arith.constant 0 : i32
    %c0_i32_0 = arith.constant 0 : i32
    return %arg0, %c0_i32 : i32, i32
  }
  func.func @transform_1(%arg0: i32) -> (i32, i32) {
    %c0_i32 = arith.constant 0 : i32
    %c0_i32_0 = arith.constant 0 : i32
    %c0_i32_1 = arith.constant 0 : i32
    return %c0_i32, %c0_i32_0 : i32, i32
  }
  func.func @transform_2(%arg0: i32) -> (i32, i32) {
    %c0_i32 = arith.constant 0 : i32
    %c0_i32_0 = arith.constant 0 : i32
    %c0_i32_1 = arith.constant 0 : i32
    return %c0_i32, %c0_i32_0 : i32, i32
  }
  func.func @transform_3(%arg0: i32) -> (i32, i32) {
    %c0_i32 = arith.constant 0 : i32
    %c0_i32_0 = arith.constant 0 : i32
    %c0_i32_1 = arith.constant 0 : i32
    return %c0_i32, %c0_i32_0 : i32, i32
  }
  func.func @transform_4(%arg0: i32) -> (i32, i32) {
    %c0_i32 = arith.constant 0 : i32
    %c0_i32_0 = arith.constant 0 : i32
    %c0_i32_1 = arith.constant 0 : i32
    return %c0_i32, %c0_i32_0 : i32, i32
  }
  func.func @transform_5(%arg0: i32) -> (i32, i32) {
    %c0_i32 = arith.constant 0 : i32
    %c0_i32_0 = arith.constant 0 : i32
    %c0_i32_1 = arith.constant 0 : i32
    return %c0_i32, %c0_i32_0 : i32, i32
  }
  func.func @transform_6(%arg0: i32) -> i32 {
    %c0_i32 = arith.constant 0 : i32
    %c0_i32_0 = arith.constant 0 : i32
    return %c0_i32 : i32
  }
  func.func @transform_7(%arg0: i32) -> (i32, i32, i32) {
    %c0_i32 = arith.constant 0 : i32
    %c0_i32_0 = arith.constant 0 : i32
    %c0_i32_1 = arith.constant 0 : i32
    return %arg0, %c0_i32, %c0_i32_0 : i32, i32, i32
  }
}

</mosaic_0001>

<bundles_post_ra>
// kernel: tpu_custom_call.1
= control target key start
LH: loop header
LB: loop body
LE: loop exit
PB: predicated region body
PF: predicated region fallthrough
CT: control target
= control target key end

     0   :  { %vm57_vm0 = vcmask 130048   ;;  %v489_v4 = vmov 0   ;;  %s604_s0 = inlined_call_operand.vmem [shape: f32[8,16], index: 0, kind: input, shape index: {}]   ;;  %s605_s1 = inlined_call_operand.vmem [shape: f32[32,16], index: 1, kind: input, shape index: {}]   ;;  %s606_s2 = inlined_call_operand.vmem [shape: f32[32,1], index: 2, kind: input, shape index: {}]   ;;  %s607_s3 = inlined_call_operand.vmem [shape: f32[32,32], index: 3, kind: input, shape index: {}]   ;;  %s608_s4 = inlined_call_operand.vmem [shape: f32[32,1], index: 4, kind: input, shape index: {}]   ;;  %s609_s5 = inlined_call_operand.vmem [shape: f32[1,32], index: 5, kind: input, shape index: {}]   ;;  %s610_s6 = inlined_call_operand.<no memory space> [shape: f32[1], index: 6, kind: input, shape index: {}]   ;;  %s611_s7 = inlined_call_operand.hbm [shape: f32[1,1,8], index: 7, kind: output, shape index: {}]  }
   0x1   :  { %v32_v0 = vld [vmem:[%s604_s0] sm:$0xff]  ;;  %v36_v2 = vld [vmem:[%s606_s2 + $0x18] sm:$0xff]  ;;  %v29_v3 = vld [vmem:[%s605_s1 + $0x8] sm:$0xff]  ;;  %449 = vset.pattern.permute.xlu0 %v489_v4  ;;  %450 = vset.pattern.permute.xlu1 %v489_v4 }
   0x2   :  { %v28_v1 = vld [vmem:[%s605_s1] sm:$0xff]  ;;  %412 = vmatprep.subr.msk.mxu0 %vm57_vm0, %v32_v0  ;;  %v34_v5 = vld [vmem:[%s606_s2 + $0x8] sm:$0xff]  ;;  %v30_v6 = vld [vmem:[%s605_s1 + $0x10] sm:$0xff]  ;;  %54 = vperm.xlu0 %449, %v36_v2  }
   0x3   :  { %414 = vmatprep.mubr.msk.f32.mxu0 %vm57_vm0, %v28_v1  ;;  %413 = vmatpush3.xpose.msk.msra.mxu0 %vm57_vm0, %v32_v0  ;;  %v35_v7 = vld [vmem:[%s606_s2 + $0x10] sm:$0xff] }
   0x4   :  { %44 = vperm.xlu1 %450, %v34_v5  }
   0x5   :  { %13 = vsyncpa [#allocation4], 0  ;;  %v33_v8 = vld [vmem:[%s606_s2] sm:$0xff]  ;;  %v31_v9 = vld [vmem:[%s605_s1 + $0x18] sm:$0xff]  ;;  %vm190_vm1 = vcmask 261120   ;;  %v490_v34 = vmov 0.0   ;;  %v294_v52 = vstv %s610_s6 }
   0x6   :  { %415 = vmatmul.mubr.msk.f32.vlgmr.msra.gmra.mxu0 %vm57_vm0, %v29_v3  ;;  %49 = vperm.xlu0 %449, %v35_v7   ;;  %v169_v10 = vld [vmem:[%s608_s4 + $0x18] sm:$0xff]  ;;  %v168_v11 = vld [vmem:[%s608_s4 + $0x10] sm:$0xff]  ;;  %v167_v12 = vld [vmem:[%s608_s4 + $0x8] sm:$0xff]  ;;  %vm491_vm2 = vmmov 0   ;;  %s492_s10 = smov [#allocation3]   ;;  %vm368_vm3 = vcmask 57344  }
   0x7   :  { %417 = vmatprep.mubr.msk.f32.mxu0 %vm57_vm0, %v30_v6  ;;  %v166_v13 = vld [vmem:[%s608_s4] sm:$0xff]  ;;  %v163_v31 = vld [vmem:[%s607_s3 + $0x8] sm:$0xff]  ;;  %v164_v32 = vld [vmem:[%s607_s3 + $0x10] sm:$0xff]  ;;  %434 = vmatprep.subr.mxu0 %v490_v34  ;;  %s376_s11 = sshll.u32 %s492_s10, 4  ;;  %s377_s11 = int_to_ptr.vmem [resolvable:$true] %s376_s11 }
   0x8   :  { %39 = vperm.xlu1 %450, %v33_v8   ;;  %v162_v14 = vld [vmem:[%s607_s3] sm:$0xff]  ;;  %v165_v33 = vld [vmem:[%s607_s3 + $0x18] sm:$0xff]  ;;  %s467_s12 = scalar_lea.vmem %s377_s11, 16  ;;  %p472_p1 = scmp.lt.s32.totalorder %s377_s11, %s377_s11 }
   0x9   :  { %428 = vmatprep.mubr.msk.f32.mxu1 %vm190_vm1, %v162_v14  ;;  %v292_v50 = vld [vmem:[%s609_s5] sm:$0x1]  ;;  %p468_p0 = scmp.ne.s32.totalorder %s377_s11, %s467_s12  ;;  %s471_s5 = scalar_lea.vmem %s377_s11, 32 }
   0xa   :  { %418 = vmatmul.mubr.msk.f32.gmra.mxu0 %vm57_vm0, %v31_v9  ;;  %187 = vperm.xlu0 %449, %v169_v10   ;;  %p473_p2 = scmp.lt.s32.totalorder %s471_s5, %s467_s12 }
   0xb   :  { %442 = vmatprep.mubr.msk.f32.mxu0 %vm491_vm2, %v490_v34 }
   0xc   :  { %182 = vperm.xlu1 %450, %v168_v11   ;;  %p474_p3 = por %p473_p2, %p472_p1 }
   0xe   :  { %177 = vperm.xlu0 %449, %v167_v12   ;;  %p475_p4 = pnand %p474_p3, %p468_p0 }
  0x10   :  { %172 = vperm.xlu1 %450, %v166_v13  }
  0x7d   :  { %v55_v15 = vpop.permute.xlu0 %54 }
  0x7f   :  { %v45_v17 = vpop.permute.xlu1 %44 }
  0x81   :  { %v50_v21 = vpop.permute.xlu0 %49 }
  0x83   :  { %v40_v25 = vpop.permute.xlu1 %39 }
  0x85   :  { %v188_v35 = vpop.permute.xlu0 %187 }
  0x87   :  { %v183_v37 = vpop.permute.xlu1 %182 }
  0x89   :  { %v178_v41 = vpop.permute.xlu0 %177 }
  0x8b   :  { %v173_v45 = vpop.permute.xlu1 %172 }
  0xc6   :  { %v416_v16 = vpop.f32.mrf.mxu0 }
  0xc7   :  { %v145_v23 = vadd.f32 %v416_v16, %v45_v17 }
  0xc8   :  { %v139_v18 = vpop.f32.mrf.mxu0 }
  0xc9   :  { %v140_v26 = vadd.f32 %v139_v18, %v40_v25 }
  0xca   :  { %v419_v19 = vpop.f32.mrf.mxu0 }
  0xcb   :  { %v155_v20 = vadd.f32 %v419_v19, %v55_v15 }
  0xcc   :  { %v149_v22 = vpop.f32.mrf.mxu0 }
  0xcd   :  { %451 = vtanh.f32 %v155_v20  ;;  %v150_v24 = vadd.f32 %v149_v22, %v50_v21 }
  0xcf   :  { %453 = vtanh.f32 %v150_v24 }
  0xd0   :  { %455 = vtanh.f32 %v145_v23 }
  0xd1   :  { %457 = vtanh.f32 %v140_v26 }
  0xda   :  { %v452_v27 = vpop.eup %451 }
  0xdb   :  { %420 = vmatprep.subr.mxu1 %v452_v27 }
  0xdc   :  { %v454_v28 = vpop.eup %453  ;;  %421 = vmatpush3.msra.mxu1 %v452_v27 }
  0xdd   :  { %422 = vmatprep.subr.mxu1 %v454_v28  ;;  %v456_v29 = vpop.eup %455 }
  0xde   :  { %423 = vmatpush3.msra.mxu1 %v454_v28  ;;  %v458_v30 = vpop.eup %457 }
  0xdf   :  { %424 = vmatprep.subr.mxu1 %v456_v29 }
  0xe0   :  { %425 = vmatpush3.msra.mxu1 %v456_v29 }
  0xe1   :  { %426 = vmatprep.subr.mxu1 %v458_v30 }
  0xe2   :  { %427 = vmatpush3.msra.mxu1 %v458_v30 }
  0xe3   :  { %429 = vmatmul.mubr.msk.f32.vlgmr.msra.gmra.mxu1 %vm190_vm1, %v163_v31 }
  0xe4   :  { %431 = vmatprep.mubr.msk.f32.mxu1 %vm190_vm1, %v164_v32 }
  0xe7   :  { %432 = vmatmul.mubr.msk.f32.gmra.mxu1 %vm190_vm1, %v165_v33 }
 0x1a3   :  { %v430_v36 = vpop.f32.mrf.mxu1 }
 0x1a4   :  { %v275_v43 = vadd.f32 %v430_v36, %v178_v41 }
 0x1a5   :  { %v269_v38 = vpop.f32.mrf.mxu1 }
 0x1a6   :  { %v270_v46 = vadd.f32 %v269_v38, %v173_v45 }
 0x1a7   :  { %v433_v39 = vpop.f32.mrf.mxu1 }
 0x1a8   :  { %v285_v40 = vadd.f32 %v433_v39, %v188_v35 }
 0x1a9   :  { %v279_v42 = vpop.f32.mrf.mxu1 }
 0x1aa   :  { %459 = vtanh.f32 %v285_v40  ;;  %v280_v44 = vadd.f32 %v279_v42, %v183_v37 }
 0x1ac   :  { %461 = vtanh.f32 %v280_v44 }
 0x1ad   :  { %463 = vtanh.f32 %v275_v43 }
 0x1ae   :  { %465 = vtanh.f32 %v270_v46 }
 0x1b7   :  { %v460_v47 = vpop.eup %459 }
 0x1b8   :  { %435 = vmatpush3.msra.mxu0 %v460_v47 }
 0x1b9   :  { %v462_v48 = vpop.eup %461  ;;  %436 = vmatprep.subr.mxu0 %v490_v34 }
 0x1ba   :  { %437 = vmatpush3.msra.mxu0 %v462_v48  ;;  %v464_v49 = vpop.eup %463 }
 0x1bb   :  { %438 = vmatprep.subr.mxu0 %v490_v34  ;;  %v466_v51 = vpop.eup %465 }
 0x1bc   :  { %439 = vmatpush3.msra.mxu0 %v464_v49 }
 0x1bd   :  { %440 = vmatprep.subr.mxu0 %v490_v34 }
 0x1be   :  { %441 = vmatpush3.msra.mxu0 %v466_v51 }
 0x1bf   :  { %443 = vmatmul.mubr.msk.f32.vlgmr.msra.gmra.mxu0 %vm190_vm1, %v292_v50 }
 0x27f   :  { %v364_v53 = vpop.f32.mrf.mxu0 }
 0x280   :  { %v365_v54 = vadd.f32 %v364_v53, %v294_v52 }
 0x281   :  { %v444_v55 = vpop.f32.mrf.mxu0 }
 0x282   :  { %369 = vst.msk [vmem:[#allocation3] sm:$0x1] %vm368_vm3, %v365_v54 }
 0x283   :  { %478 = shalt.err (!%p475_p4)
}
 0x284   :  { %379 = dma.vmem_to_hbm [thread:$0]  %s377_s11, 16, %s611_s7, [#allocation4]  }
 0x285   :  { %487 = dma.done.wait [#allocation4], 16  }
 0x286   :  { %488 = vsyncadd [#allocation4], 4294967280 }
 0x287   :  { %383 = vsyncpa [#allocation4], 1 }

</bundles_post_ra>
